<compile_context>
chip_gen: v7x
topology: tpu7x:2x2x1
jax: 0.10.0
libtpu: 0.0.40
codegen_flags: <defaults>
</compile_context>

<pallas_src>
import functools
import math

import jax
import jax.numpy as jnp
from jax.experimental import pallas as pl
from jax.experimental.pallas import tpu as pltpu


def _gelu_exact(x):
    # matches torch.nn.GELU() default (erf-based, not tanh approximation)
    return x * 0.5 * (1.0 + jax.lax.erf(x * (1.0 / math.sqrt(2.0))))


def _jacobi_kan_kernel(x_ref, w_ref, avg_ref, bias_ref, g_ref, b_ref, o_ref,
                       *, degree, a, b, eps):
    """All arrays are lane-dense:
       x_ref   : (tb_r, 8*in_dim)   -- 8 logical rows per dense row
       w_ref   : ((degree+1)*8*in_dim, 8*out_dim)  block-diagonal packed weights
       avg_ref : (8*out_dim, 8*out_dim) segmented 1/out_dim averaging matrix
       bias/g/b: (1, 8*out_dim)
       o_ref   : (tb_r, 8*out_dim)
    """
    x = x_ref[...]                                   # f32, lane-dense
    wdt = w_ref.dtype

    gx = _gelu_exact(x)                              # base-branch activation
    t = jnp.tanh(x)                                  # Jacobi argument

    # Feature slab pieces (each 128-lane wide) -> concat at 128 boundaries only.
    feats = [gx.astype(wdt)]                         # base branch
    if degree > 0:
        p1 = (a - b + (a + b + 2.0) * t) * 0.5       # P_1
        feats.append(p1.astype(wdt))
        p_km2 = None                                 # P_0 == 1 handled as scalar
        p_km1 = p1
        for i in range(2, degree + 1):               # static unroll at trace time
            theta_k = (2 * i + a + b) * (2 * i + a + b - 1) / (2 * i * (i + a + b))
            theta_k1 = ((2 * i + a + b - 1) * (a * a - b * b)
                        / (2 * i * (i + a + b) * (2 * i + a + b - 2)))
            theta_k2 = ((i + a - 1) * (i + b - 1) * (2 * i + a + b)
                        / (i * (i + a + b) * (2 * i + a + b - 2)))
            if p_km2 is None:
                p_k = (theta_k * t + theta_k1) * p_km1 - theta_k2
            else:
                p_k = (theta_k * t + theta_k1) * p_km1 - theta_k2 * p_km2
            feats.append(p_k.astype(wdt))
            p_km2, p_km1 = p_km1, p_k

    feat = feats[0] if len(feats) == 1 else jnp.concatenate(feats, axis=-1)

    # Single fused MXU matmul, f32 accumulation.  Output stays lane-dense:
    # lane group s of dense row r holds output row 8*r + s.
    y = jnp.dot(feat, w_ref[...], preferred_element_type=jnp.float32)
    y = y + bias_ref[...]                            # folded P_0 contribution

    # Segmented LayerNorm over each out_dim-lane group via averaging matmuls.
    avg = avg_ref[...]
    mean = jnp.dot(y, avg, preferred_element_type=jnp.float32)
    d = y - mean
    var = jnp.dot(d * d, avg, preferred_element_type=jnp.float32)
    y_n = d * jax.lax.rsqrt(var + eps)
    y_n = y_n * g_ref[...] + b_ref[...]
    o_ref[...] = _gelu_exact(y_n).astype(o_ref.dtype)


def pack_jacobi_kan_params(base_weights, jacobi_coeffs, ln_gamma, ln_beta,
                           *, degree, matmul_dtype=jnp.bfloat16, group=8):
    """One-time weight packing (hoisted out of the per-call path)."""
    out_dim, in_dim = base_weights.shape
    assert (group * in_dim) % 128 == 0 and (group * out_dim) % 128 == 0, (
        "lane-dense path needs in_dim and out_dim to be multiples of 16")
    # TODO(synk): general in_dim/out_dim not multiples of 16 would need lane padding.

    branches = [jnp.transpose(base_weights).astype(jnp.float32)]       # base branch
    for k in range(1, degree + 1):
        branches.append(jacobi_coeffs[:, :, k].astype(jnp.float32))    # degree-k branch

    eye = jnp.eye(group, dtype=jnp.float32)
    # kron(I_g, W): block-diagonal so lane group s maps onto output lane group s.
    w_big = jnp.concatenate([jnp.kron(eye, w) for w in branches],
                            axis=0).astype(matmul_dtype)               # (nb*g*in, g*out)

    # P_0 == 1 contribution folded into a per-output-channel bias.
    bias0 = jnp.sum(jacobi_coeffs[:, :, 0].astype(jnp.float32), axis=0)  # (out_dim,)
    n = group * out_dim
    bias_t = jnp.tile(bias0, group).reshape(1, n)
    gamma_t = jnp.tile(ln_gamma.astype(jnp.float32), group).reshape(1, n)
    beta_t = jnp.tile(ln_beta.astype(jnp.float32), group).reshape(1, n)

    grp = jnp.arange(n) // out_dim
    avg = (grp[:, None] == grp[None, :]).astype(jnp.float32) / out_dim   # (n, n)

    return dict(w_big=w_big, avg=avg, bias=bias_t, gamma=gamma_t, beta=beta_t,
                in_dim=in_dim, out_dim=out_dim, degree=degree, group=group)


def _pick_tile(batch, requested, align):
    requested = max(align, (int(requested) // align) * align)
    if batch >= requested:
        return requested
    return max(align, -(-batch // align) * align)     # round batch up to `align`


def jacobi_kan_forward(x, packed, *, a=1.0, b=1.0, eps=1e-5, tile_b=2048,
                       out_dtype=jnp.float32):
    """Forward pass of JacobiKANLayer with pre-packed parameters."""
    in_dim = packed["in_dim"]
    out_dim = packed["out_dim"]
    degree = packed["degree"]
    g = packed["group"]

    x2 = jnp.reshape(x, (-1, in_dim)).astype(jnp.float32)
    B = x2.shape[0]

    tb = _pick_tile(B, tile_b, 8 * g)                 # rows per grid step
    grid_b = pl.cdiv(B, tb)
    B_pad = grid_b * tb
    if B_pad != B:
        x2 = jnp.pad(x2, ((0, B_pad - B), (0, 0)))

    # Free metadata reshapes to lane-dense views.
    x_dense = x2.reshape(B_pad // g, g * in_dim)
    tb_r = tb // g
    Lin = g * in_dim
    Lout = g * out_dim
    K = packed["w_big"].shape[0]

    kernel = functools.partial(_jacobi_kan_kernel, degree=degree,
                               a=float(a), b=float(b), eps=float(eps))

    out = pl.pallas_call(
        kernel,
        out_shape=jax.ShapeDtypeStruct((B_pad // g, Lout), out_dtype),
        grid_spec=pltpu.PrefetchScalarGridSpec(
            num_scalar_prefetch=0,
            grid=(grid_b,),
            in_specs=[
                pl.BlockSpec((tb_r, Lin), lambda i: (i, 0)),       # x (lane-dense)
                pl.BlockSpec((K, Lout), lambda i: (0, 0)),         # packed weights
                pl.BlockSpec((Lout, Lout), lambda i: (0, 0)),      # averaging matrix
                pl.BlockSpec((1, Lout), lambda i: (0, 0)),         # P_0 bias
                pl.BlockSpec((1, Lout), lambda i: (0, 0)),         # gamma (tiled)
                pl.BlockSpec((1, Lout), lambda i: (0, 0)),         # beta (tiled)
            ],
            out_specs=pl.BlockSpec((tb_r, Lout), lambda i: (i, 0)),
        ),
        compiler_params=pltpu.CompilerParams(
            dimension_semantics=("parallel",)),
    )(x_dense, packed["w_big"], packed["avg"], packed["bias"],
      packed["gamma"], packed["beta"])

    out = out.reshape(B_pad, out_dim)                 # free metadata reshape back
    if B_pad != B:
        out = out[:B]
    return out


def jacobi_kan_reference(x, base_weights, jacobi_coeffs, ln_gamma, ln_beta,
                         *, degree, a=1.0, b=1.0, eps=1e-5):
    in_dim = base_weights.shape[1]
    x2 = jnp.reshape(x, (-1, in_dim)).astype(jnp.float32)
    basis = jnp.dot(_gelu_exact(x2), base_weights.T,
                    precision=jax.lax.Precision.HIGHEST)
    t = jnp.tanh(x2)
    polys = [jnp.ones_like(t)]
    if degree > 0:
        polys.append((a - b + (a + b + 2.0) * t) / 2.0)
    for i in range(2, degree + 1):
        theta_k = (2 * i + a + b) * (2 * i + a + b - 1) / (2 * i * (i + a + b))
        theta_k1 = ((2 * i + a + b - 1) * (a * a - b * b)
                    / (2 * i * (i + a + b) * (2 * i + a + b - 2)))
        theta_k2 = ((i + a - 1) * (i + b - 1) * (2 * i + a + b)
                    / (i * (i + a + b) * (2 * i + a + b - 2)))
        polys.append((theta_k * t + theta_k1) * polys[-1] - theta_k2 * polys[-2])
    jac = jnp.stack(polys, axis=-1)                   # (B, In, D+1)
    y = jnp.einsum('bid,iod->bo', jac, jacobi_coeffs,
                   precision=jax.lax.Precision.HIGHEST)
    y = y + basis
    mean = jnp.mean(y, axis=-1, keepdims=True)
    var = jnp.mean((y - mean) ** 2, axis=-1, keepdims=True)
    y = (y - mean) * jax.lax.rsqrt(var + eps)
    y = y * ln_gamma[None, :] + ln_beta[None, :]
    return _gelu_exact(y)


if __name__ == "__main__":
    # module config
    input_dim, output_dim, degree = 16, 32, 3
    a_param, b_param = 1.0, 1.0

    key = jax.random.PRNGKey(0)
    k_x, k_jc, k_bw = jax.random.split(key, 3)

    # example input (reshape(-1, 16) -> 128 rows)
    x = jax.random.normal(k_x, (2, 4, 16, 16), dtype=jnp.float32)

    # deterministic parameter init mirroring __init__
    jacobi_coeffs = (1.0 / (input_dim * (degree + 1))) * jax.random.normal(
        k_jc, (input_dim, output_dim, degree + 1), dtype=jnp.float32)
    bound = math.sqrt(6.0 / (input_dim + output_dim))        # xavier_uniform_
    base_weights = jax.random.uniform(
        k_bw, (output_dim, input_dim), minval=-bound, maxval=bound,
        dtype=jnp.float32)
    ln_gamma = jnp.ones((output_dim,), jnp.float32)           # LayerNorm defaults
    ln_beta = jnp.zeros((output_dim,), jnp.float32)

    ref = jacobi_kan_reference(x, base_weights, jacobi_coeffs, ln_gamma, ln_beta,
                               degree=degree, a=a_param, b=b_param)

    # Accuracy path: f32 matmul operands.
    packed_f32 = pack_jacobi_kan_params(base_weights, jacobi_coeffs, ln_gamma,
                                        ln_beta, degree=degree,
                                        matmul_dtype=jnp.float32)
    out_f32 = jacobi_kan_forward(x, packed_f32, a=a_param, b=b_param)
    out_f32 = jax.block_until_ready(out_f32)
    assert out_f32.shape == (128, output_dim)
    assert jnp.allclose(out_f32, ref, atol=2.5e-2, rtol=2.5e-2), \
        "f32 mismatch vs reference"

    # Performance path: bf16 matmul operands with f32 accumulation (default).
    packed = pack_jacobi_kan_params(base_weights, jacobi_coeffs, ln_gamma,
                                    ln_beta, degree=degree,
                                    matmul_dtype=jnp.bfloat16)
    out = jacobi_kan_forward(x, packed, a=a_param, b=b_param)
    out = jax.block_until_ready(out)
    assert out.shape == (128, output_dim)
    assert jnp.allclose(out, ref, atol=5e-2, rtol=5e-2), "bf16 mismatch vs reference"

    print("KERNEL_OK")
</pallas_src>

<mosaic_0001>
module attributes {stable_mosaic.version = 11 : i64} {
  func.func @_jacobi_kan_kernel(%arg0: i32, %arg1: memref<16x128xf32, #tpu.memory_space<vmem>>, %arg2: memref<512x256xf32, #tpu.memory_space<vmem>>, %arg3: memref<256x256xf32, #tpu.memory_space<vmem>>, %arg4: memref<1x256xf32, #tpu.memory_space<vmem>>, %arg5: memref<1x256xf32, #tpu.memory_space<vmem>>, %arg6: memref<1x256xf32, #tpu.memory_space<vmem>>, %arg7: memref<16x256xf32, #tpu.memory_space<vmem>>) attributes {dimension_semantics = [#tpu.dimension_semantics<parallel>], iteration_bounds = array<i64: 1>, scalar_prefetch = 0 : i64, scratch_operands = 0 : i64, tpu.core_type = #tpu.core_type<tc>, window_params = [{transform_indices = @transform_0, window_bounds = array<i64: 16, 128>}, {pipeline_mode = #tpu.pipeline_mode<synchronous>, transform_indices = @transform_1, window_bounds = array<i64: 512, 256>}, {pipeline_mode = #tpu.pipeline_mode<synchronous>, transform_indices = @transform_2, window_bounds = array<i64: 256, 256>}, {pipeline_mode = #tpu.pipeline_mode<synchronous>, transform_indices = @transform_3, window_bounds = array<i64: 1, 256>}, {pipeline_mode = #tpu.pipeline_mode<synchronous>, transform_indices = @transform_4, window_bounds = array<i64: 1, 256>}, {pipeline_mode = #tpu.pipeline_mode<synchronous>, transform_indices = @transform_5, window_bounds = array<i64: 1, 256>}, {transform_indices = @transform_6, window_bounds = array<i64: 16, 256>}]} {
    %c0 = arith.constant 0 : index
    %c0_0 = arith.constant 0 : index
    %0 = vector.load %arg1[%c0, %c0_0] : memref<16x128xf32, #tpu.memory_space<vmem>>, vector<16x128xf32>
    %cst = arith.constant 5.000000e-01 : f32
    %1 = vector.broadcast %cst : f32 to vector<16x128xf32>
    %2 = arith.mulf %0, %1 : vector<16x128xf32>
    %cst_1 = arith.constant 0.707106769 : f32
    %3 = vector.broadcast %cst_1 : f32 to vector<16x128xf32>
    %4 = arith.mulf %0, %3 : vector<16x128xf32>
    %5 = math.erf %4 : vector<16x128xf32>
    %cst_2 = arith.constant 1.000000e+00 : f32
    %6 = vector.broadcast %cst_2 : f32 to vector<16x128xf32>
    %7 = arith.addf %6, %5 : vector<16x128xf32>
    %8 = arith.mulf %2, %7 : vector<16x128xf32>
    %9 = math.tanh %0 : vector<16x128xf32>
    %cst_3 = arith.constant 4.000000e+00 : f32
    %10 = vector.broadcast %cst_3 : f32 to vector<16x128xf32>
    %11 = arith.mulf %10, %9 : vector<16x128xf32>
    %cst_4 = arith.constant 0.000000e+00 : f32
    %12 = vector.broadcast %cst_4 : f32 to vector<16x128xf32>
    %13 = arith.addf %12, %11 : vector<16x128xf32>
    %cst_5 = arith.constant 5.000000e-01 : f32
    %14 = vector.broadcast %cst_5 : f32 to vector<16x128xf32>
    %15 = arith.mulf %13, %14 : vector<16x128xf32>
    %cst_6 = arith.constant 1.875000e+00 : f32
    %16 = vector.broadcast %cst_6 : f32 to vector<16x128xf32>
    %17 = arith.mulf %16, %9 : vector<16x128xf32>
    %cst_7 = arith.constant 0.000000e+00 : f32
    %18 = vector.broadcast %cst_7 : f32 to vector<16x128xf32>
    %19 = arith.addf %17, %18 : vector<16x128xf32>
    %20 = arith.mulf %19, %15 : vector<16x128xf32>
    %cst_8 = arith.constant 7.500000e-01 : f32
    %21 = vector.broadcast %cst_8 : f32 to vector<16x128xf32>
    %22 = arith.subf %20, %21 : vector<16x128xf32>
    %cst_9 = arith.constant 1.86666667 : f32
    %23 = vector.broadcast %cst_9 : f32 to vector<16x128xf32>
    %24 = arith.mulf %23, %9 : vector<16x128xf32>
    %cst_10 = arith.constant 0.000000e+00 : f32
    %25 = vector.broadcast %cst_10 : f32 to vector<16x128xf32>
    %26 = arith.addf %24, %25 : vector<16x128xf32>
    %27 = arith.mulf %26, %22 : vector<16x128xf32>
    %cst_11 = arith.constant 8.000000e-01 : f32
    %28 = vector.broadcast %cst_11 : f32 to vector<16x128xf32>
    %29 = arith.mulf %28, %15 : vector<16x128xf32>
    %30 = arith.subf %27, %29 : vector<16x128xf32>
    %31 = tpu.concatenate %8, %15, %22, %30 in 1 : vector<16x128xf32>, vector<16x128xf32>, vector<16x128xf32>, vector<16x128xf32> -> vector<16x512xf32>
    %c0_12 = arith.constant 0 : index
    %c0_13 = arith.constant 0 : index
    %32 = vector.load %arg2[%c0_12, %c0_13] : memref<512x256xf32, #tpu.memory_space<vmem>>, vector<512x256xf32>
    %cst_14 = arith.constant dense<0.000000e+00> : vector<16x256xf32>
    %33 = tpu.matmul %31, %32, %cst_14 {dimension_numbers = #tpu.dot_dimension_numbers<[1], [0], [0], [1], [0, 0, 1, 1], [], []>} : vector<16x512xf32>, vector<512x256xf32>, vector<16x256xf32> -> vector<16x256xf32>
    %c0_15 = arith.constant 0 : index
    %c0_16 = arith.constant 0 : index
    %34 = vector.load %arg4[%c0_15, %c0_16] : memref<1x256xf32, #tpu.memory_space<vmem>>, vector<1x256xf32>
    %35 = vector.broadcast %34 : vector<1x256xf32> to vector<16x256xf32>
    %36 = arith.addf %33, %35 : vector<16x256xf32>
    %c0_17 = arith.constant 0 : index
    %c0_18 = arith.constant 0 : index
    %37 = vector.load %arg3[%c0_17, %c0_18] : memref<256x256xf32, #tpu.memory_space<vmem>>, vector<256x256xf32>
    %cst_19 = arith.constant dense<0.000000e+00> : vector<16x256xf32>
    %38 = tpu.matmul %36, %37, %cst_19 {dimension_numbers = #tpu.dot_dimension_numbers<[1], [0], [0], [1], [0, 0, 1, 1], [], []>} : vector<16x256xf32>, vector<256x256xf32>, vector<16x256xf32> -> vector<16x256xf32>
    %39 = arith.subf %36, %38 : vector<16x256xf32>
    %40 = arith.mulf %39, %39 : vector<16x256xf32>
    %cst_20 = arith.constant dense<0.000000e+00> : vector<16x256xf32>
    %41 = tpu.matmul %40, %37, %cst_20 {dimension_numbers = #tpu.dot_dimension_numbers<[1], [0], [0], [1], [0, 0, 1, 1], [], []>} : vector<16x256xf32>, vector<256x256xf32>, vector<16x256xf32> -> vector<16x256xf32>
    %cst_21 = arith.constant 9.99999974E-6 : f32
    %42 = vector.broadcast %cst_21 : f32 to vector<16x256xf32>
    %43 = arith.addf %41, %42 : vector<16x256xf32>
    %44 = math.rsqrt %43 : vector<16x256xf32>
    %45 = arith.mulf %39, %44 : vector<16x256xf32>
    %c0_22 = arith.constant 0 : index
    %c0_23 = arith.constant 0 : index
    %46 = vector.load %arg5[%c0_22, %c0_23] : memref<1x256xf32, #tpu.memory_space<vmem>>, vector<1x256xf32>
    %47 = vector.broadcast %46 : vector<1x256xf32> to vector<16x256xf32>
    %48 = arith.mulf %45, %47 : vector<16x256xf32>
    %c0_24 = arith.constant 0 : index
    %c0_25 = arith.constant 0 : index
    %49 = vector.load %arg6[%c0_24, %c0_25] : memref<1x256xf32, #tpu.memory_space<vmem>>, vector<1x256xf32>
    %50 = vector.broadcast %49 : vector<1x256xf32> to vector<16x256xf32>
    %51 = arith.addf %48, %50 : vector<16x256xf32>
    %cst_26 = arith.constant 5.000000e-01 : f32
    %52 = vector.broadcast %cst_26 : f32 to vector<16x256xf32>
    %53 = arith.mulf %51, %52 : vector<16x256xf32>
    %cst_27 = arith.constant 0.707106769 : f32
    %54 = vector.broadcast %cst_27 : f32 to vector<16x256xf32>
    %55 = arith.mulf %51, %54 : vector<16x256xf32>
    %56 = math.erf %55 : vector<16x256xf32>
    %cst_28 = arith.constant 1.000000e+00 : f32
    %57 = vector.broadcast %cst_28 : f32 to vector<16x256xf32>
    %58 = arith.addf %57, %56 : vector<16x256xf32>
    %59 = arith.mulf %53, %58 : vector<16x256xf32>
    %c0_29 = arith.constant 0 : index
    %c0_30 = arith.constant 0 : index
    %60 = vector.load %arg7[%c0_29, %c0_30] : memref<16x256xf32, #tpu.memory_space<vmem>>, vector<16x256xf32>
    tpu.vector_store %arg7[%c0_29, %c0_30], %59 {strides = array<i32>} : memref<16x256xf32, #tpu.memory_space<vmem>>, vector<16x256xf32>,
    return
  }
  func.func @transform_0(%arg0: i32) -> (i32, i32) {
    %c0_i32 = arith.constant 0 : i32
    %c0_i32_0 = arith.constant 0 : i32
    return %arg0, %c0_i32 : i32, i32
  }
  func.func @transform_1(%arg0: i32) -> (i32, i32) {
    %c0_i32 = arith.constant 0 : i32
    %c0_i32_0 = arith.constant 0 : i32
    %c0_i32_1 = arith.constant 0 : i32
    return %c0_i32, %c0_i32_0 : i32, i32
  }
  func.func @transform_2(%arg0: i32) -> (i32, i32) {
    %c0_i32 = arith.constant 0 : i32
    %c0_i32_0 = arith.constant 0 : i32
    %c0_i32_1 = arith.constant 0 : i32
    return %c0_i32, %c0_i32_0 : i32, i32
  }
  func.func @transform_3(%arg0: i32) -> (i32, i32) {
    %c0_i32 = arith.constant 0 : i32
    %c0_i32_0 = arith.constant 0 : i32
    %c0_i32_1 = arith.constant 0 : i32
    return %c0_i32, %c0_i32_0 : i32, i32
  }
  func.func @transform_4(%arg0: i32) -> (i32, i32) {
    %c0_i32 = arith.constant 0 : i32
    %c0_i32_0 = arith.constant 0 : i32
    %c0_i32_1 = arith.constant 0 : i32
    return %c0_i32, %c0_i32_0 : i32, i32
  }
  func.func @transform_5(%arg0: i32) -> (i32, i32) {
    %c0_i32 = arith.constant 0 : i32
    %c0_i32_0 = arith.constant 0 : i32
    %c0_i32_1 = arith.constant 0 : i32
    return %c0_i32, %c0_i32_0 : i32, i32
  }
  func.func @transform_6(%arg0: i32) -> (i32, i32) {
    %c0_i32 = arith.constant 0 : i32
    %c0_i32_0 = arith.constant 0 : i32
    return %arg0, %c0_i32 : i32, i32
  }
}

</mosaic_0001>

<bundles_post_ra>
// kernel: tpu_custom_call.1
= control target key start
LH: loop header
LB: loop body
LE: loop exit
PB: predicated region body
PF: predicated region fallthrough
CT: control target
= control target key end

     0   :  { %11 = vsyncpa [#allocation3], 0  ;;  %s1370_s0 = inlined_call_operand.hbm [shape: f32[16,128], index: 0, kind: input, shape index: {}]   ;;  %s1371_s1 = inlined_call_operand.hbm [shape: f32[512,256], index: 1, kind: input, shape index: {}]   ;;  %s1372_s2 = inlined_call_operand.hbm [shape: f32[256,256], index: 2, kind: input, shape index: {}]   ;;  %s1373_s3 = inlined_call_operand.vmem [shape: f32[1,256], index: 3, kind: input, shape index: {}]   ;;  %s1374_s4 = inlined_call_operand.vmem [shape: f32[1,256], index: 4, kind: input, shape index: {}]   ;;  %s1375_s5 = inlined_call_operand.vmem [shape: f32[1,256], index: 5, kind: input, shape index: {}]   ;;  %s1376_s6 = inlined_call_operand.hbm [shape: f32[16,256], index: 6, kind: output, shape index: {}]  }
   0x1   :  { %12 = vsyncpa [#allocation6], 0 }
   0x2   :  { %13 = vsyncpa [#allocation4], 0  ;;  %s1097_s21 = smov [#allocation5]   ;;  %s1003_s25 = scalar_lea.hbm %s1371_s1, 16384 }
   0x3   :  { %s31_s22 = sshll.u32 %s1097_s21, 4  ;;  %p1004_p0 = scmp.ne.s32.totalorder %s1371_s1, %s1003_s25  ;;  %s32_s22 = int_to_ptr.vmem [resolvable:$true] %s31_s22 }
   0x4   :  { %p1007_p1 = scmp.lt.u32.totalorder %s1003_s25, %s1371_s1 }
   0x6   :  { %p1009_p2 = pnand %p1007_p1, %p1004_p0 }
   0x8   :  { %1012 = shalt.err (!%p1009_p2)
}
   0x9   :  { %s1013_s30 = scalar_lea.vmem %s32_s22, 16384  ;;  %p1018_p4 = scmp.lt.s32.totalorder %s32_s22, %s32_s22 }
   0xa   :  { %p1014_p3 = scmp.ne.s32.totalorder %s32_s22, %s1013_s30  ;;  %p1019_p5 = scmp.lt.s32.totalorder %s1013_s30, %s1013_s30 }
   0xc   :  { %p1020_p6 = por %p1019_p5, %p1018_p4 }
   0xe   :  { %p1021_p7 = pnand %p1020_p6, %p1014_p3 }
  0x10   :  { %1024 = shalt.err (!%p1021_p7)
}
  0x11   :  { %s1098_s7 = smov 256   ;;  %s1099_s8 = smov 16  }
  0x12   :  { %37 = dma.hbm_to_vmem [thread:$0]  %s1371_s1, 16384, %s32_s22, [#allocation6], %s1098_s7, %s1098_s7, %s1099_s8  }
  0x13   :  { %s1100_s11 = smov [#allocation2]   ;;  %s1025_s15 = scalar_lea.hbm %s1370_s0, 256 }
  0x14   :  { %s19_s12 = sshll.u32 %s1100_s11, 4  ;;  %p1026_p8 = scmp.ne.s32.totalorder %s1370_s0, %s1025_s15  ;;  %s20_s12 = int_to_ptr.vmem [resolvable:$true] %s19_s12 }
  0x15   :  { %p1029_p9 = scmp.lt.u32.totalorder %s1025_s15, %s1370_s0 }
  0x17   :  { %p1031_p10 = pnand %p1029_p9, %p1026_p8 }
  0x19   :  { %1034 = shalt.err (!%p1031_p10)
}
  0x1a   :  { %s1035_s20 = scalar_lea.vmem %s20_s12, 256  ;;  %p1040_p12 = scmp.lt.s32.totalorder %s20_s12, %s20_s12 }
  0x1b   :  { %p1036_p11 = scmp.ne.s32.totalorder %s20_s12, %s1035_s20  ;;  %p1041_p13 = scmp.lt.s32.totalorder %s1035_s20, %s1035_s20 }
  0x1d   :  { %p1042_p0 = por %p1041_p13, %p1040_p12 }
  0x1f   :  { %p1043_p1 = pnand %p1042_p0, %p1036_p11 }
  0x21   :  { %1046 = shalt.err (!%p1043_p1)
}
  0x22   :  { %s1101_s1 = smov 128   ;;  %s1102_s21 = smov 8  }
  0x23   :  { %25 = dma.hbm_to_vmem [thread:$0]  %s1370_s0, 256, %s20_s12, [#allocation3], %s1101_s1, %s1101_s1, %s1102_s21  }
  0x24   :  { %s1103_s24 = smov [#allocation7]   ;;  %s1047_s28 = scalar_lea.hbm %s1372_s2, 8192 }
  0x25   :  { %s43_s25 = sshll.u32 %s1103_s24, 4  ;;  %p1048_p2 = scmp.ne.s32.totalorder %s1372_s2, %s1047_s28  ;;  %s44_s25 = int_to_ptr.vmem [resolvable:$true] %s43_s25 }
  0x26   :  { %p1051_p3 = scmp.lt.u32.totalorder %s1047_s28, %s1372_s2 }
  0x28   :  { %p1053_p4 = pnand %p1051_p3, %p1048_p2 }
  0x2a   :  { %1056 = shalt.err (!%p1053_p4)
}
  0x2b   :  { %s1057_s11 = scalar_lea.vmem %s44_s25, 8192  ;;  %p1062_p6 = scmp.lt.s32.totalorder %s44_s25, %s44_s25 }
  0x2c   :  { %p1058_p5 = scmp.ne.s32.totalorder %s44_s25, %s1057_s11  ;;  %p1063_p7 = scmp.lt.s32.totalorder %s1057_s11, %s1057_s11 }
  0x2e   :  { %p1064_p8 = por %p1063_p7, %p1062_p6 }
  0x30   :  { %p1065_p9 = pnand %p1064_p8, %p1058_p5 }
  0x32   :  { %1068 = shalt.err (!%p1065_p9)
}
  0x33   :  { %49 = dma.hbm_to_vmem [thread:$0]  %s1372_s2, 8192, %s44_s25, [#allocation6], %s1098_s7, %s1098_s7, %s1099_s8  }
  0x34   :  { %1091 = dma.done.wait [#allocation3], 256  }
  0x35   :  { %1092 = vsyncadd [#allocation3], 4294967040 }
  0x36   :  { %1093 = dma.done.wait [#allocation6], 24576  }
  0x37   :  { %1094 = vsyncadd [#allocation6], 4294942720  ;;  %v104_v0 = vld [vmem:[#allocation5 + $0x8] sm:$0xff]  ;;  %v106_v1 = vld [vmem:[#allocation5 + $0x18] sm:$0xff] }
  0x38   :  { %v103_v2 = vld [vmem:[#allocation5] sm:$0xff]  ;;  %v707_v3 = vpack.c.bf16 %v106_v1, %v104_v0  ;;  %v105_v4 = vld [vmem:[#allocation5 + $0x10] sm:$0xff]  ;;  %v108_v5 = vld [vmem:[#allocation5 + $0x28] sm:$0xff] }
  0x39   :  { %v110_v6 = vld [vmem:[#allocation5 + $0x38] sm:$0xff]  ;;  %v709_v7 = vpack.c.bf16 %v105_v4, %v103_v2  ;;  %v107_v9 = vld [vmem:[#allocation5 + $0x20] sm:$0xff]  ;;  %v109_v10 = vld [vmem:[#allocation5 + $0x30] sm:$0xff] }
  0x3a   :  { %v711_v8 = vpack.c.bf16 %v110_v6, %v108_v5  ;;  %v112_v11 = vld [vmem:[#allocation5 + $0x48] sm:$0xff]  ;;  %708 = vmatprep.subr.bf16.mxu0 %v707_v3  ;;  %v114_v12 = vld [vmem:[#allocation5 + $0x58] sm:$0xff]  ;;  %v713_v13 = vpack.c.bf16 %v109_v10, %v107_v9  ;;  %v111_v15 = vld [vmem:[#allocation5 + $0x40] sm:$0xff] }
  0x3b   :  { %710 = vmatpush1.bf16.msra.mxu0 %v709_v7  ;;  %v715_v14 = vpack.c.bf16 %v114_v12, %v112_v11  ;;  %v113_v16 = vld [vmem:[#allocation5 + $0x50] sm:$0xff]  ;;  %v116_v17 = vld [vmem:[#allocation5 + $0x68] sm:$0xff]  ;;  %v118_v18 = vld [vmem:[#allocation5 + $0x78] sm:$0xff] }
  0x3c   :  { %712 = vmatprep.subr.bf16.mxu0 %v711_v8  ;;  %v717_v19 = vpack.c.bf16 %v113_v16, %v111_v15  ;;  %v719_v20 = vpack.c.bf16 %v118_v18, %v116_v17  ;;  %v115_v21 = vld [vmem:[#allocation5 + $0x60] sm:$0xff]  ;;  %v117_v22 = vld [vmem:[#allocation5 + $0x70] sm:$0xff]  ;;  %v120_v23 = vld [vmem:[#allocation5 + $0x88] sm:$0xff] }
  0x3d   :  { %v122_v24 = vld [vmem:[#allocation5 + $0x98] sm:$0xff]  ;;  %v721_v25 = vpack.c.bf16 %v117_v22, %v115_v21  ;;  %v119_v27 = vld [vmem:[#allocation5 + $0x80] sm:$0xff]  ;;  %v121_v28 = vld [vmem:[#allocation5 + $0x90] sm:$0xff] }
  0x3e   :  { %v723_v26 = vpack.c.bf16 %v122_v24, %v120_v23  ;;  %v124_v29 = vld [vmem:[#allocation5 + $0xa8] sm:$0xff]  ;;  %v126_v30 = vld [vmem:[#allocation5 + $0xb8] sm:$0xff]  ;;  %v725_v31 = vpack.c.bf16 %v121_v28, %v119_v27  ;;  %v123_v33 = vld [vmem:[#allocation5 + $0xa0] sm:$0xff] }
  0x3f   :  { %714 = vmatpush1.bf16.msra.mxu0 %v713_v13  ;;  %v727_v32 = vpack.c.bf16 %v126_v30, %v124_v29  ;;  %v125_v34 = vld [vmem:[#allocation5 + $0xb0] sm:$0xff]  ;;  %v128_v35 = vld [vmem:[#allocation5 + $0xc8] sm:$0xff]  ;;  %v130_v36 = vld [vmem:[#allocation5 + $0xd8] sm:$0xff] }
  0x40   :  { %716 = vmatprep.subr.bf16.mxu0 %v715_v14  ;;  %v729_v37 = vpack.c.bf16 %v125_v34, %v123_v33  ;;  %v731_v38 = vpack.c.bf16 %v130_v36, %v128_v35  ;;  %v127_v39 = vld [vmem:[#allocation5 + $0xc0] sm:$0xff]  ;;  %v129_v40 = vld [vmem:[#allocation5 + $0xd0] sm:$0xff]  ;;  %v132_v42 = vld [vmem:[#allocation5 + $0xe8] sm:$0xff] }
  0x41   :  { %v1182_v41 = vld [vmem:[#allocation2] sm:$0xff]  ;;  %v134_v43 = vld [vmem:[#allocation5 + $0xf8] sm:$0xff]  ;;  %v733_v44 = vpack.c.bf16 %v129_v40, %v127_v39  ;;  %v131_v46 = vld [vmem:[#allocation5 + $0xe0] sm:$0xff] }
  0x42   :  { %979 = vtanh.f32 %v1182_v41  ;;  %v735_v45 = vpack.c.bf16 %v134_v43, %v132_v42  ;;  %v133_v47 = vld [vmem:[#allocation5 + $0xf0] sm:$0xff]  ;;  %v136_v48 = vld [vmem:[#allocation5 + $0x108] sm:$0xff]  ;;  %v138_v49 = vld [vmem:[#allocation5 + $0x118] sm:$0xff]  ;;  %v69_v13 = vmul.f32 0.70710677, %v1182_v41 }
  0x43   :  { %718 = vmatpush1.bf16.msra.mxu0 %v717_v19  ;;  %v737_v50 = vpack.c.bf16 %v133_v47, %v131_v46  ;;  %v739_v51 = vpack.c.bf16 %v138_v49, %v136_v48  ;;  %v135_v52 = vld [vmem:[#allocation5 + $0x100] sm:$0xff]  ;;  %v137_v53 = vld [vmem:[#allocation5 + $0x110] sm:$0xff]  ;;  %v140_v54 = vld [vmem:[#allocation5 + $0x128] sm:$0xff] }
  0x44   :  { %720 = vmatprep.subr.bf16.mxu0 %v719_v20  ;;  %v142_v55 = vld [vmem:[#allocation5 + $0x138] sm:$0xff]  ;;  %v741_v57 = vpack.c.bf16 %v137_v53, %v135_v52  ;;  %v139_v59 = vld [vmem:[#allocation5 + $0x120] sm:$0xff]  ;;  %v141_v60 = vld [vmem:[#allocation5 + $0x130] sm:$0xff]  ;;  %981 = verf.f32 %v69_v13 }
  0x45   :  { %v743_v58 = vpack.c.bf16 %v142_v55, %v140_v54  ;;  %v144_v62 = vld [vmem:[#allocation5 + $0x148] sm:$0xff]  ;;  %v146_v63 = vld [vmem:[#allocation5 + $0x158] sm:$0xff]  ;;  %v745_v1 = vpack.c.bf16 %v141_v60, %v139_v59  ;;  %v143_v3 = vld [vmem:[#allocation5 + $0x140] sm:$0xff] }
  0x46   :  { %v747_v2 = vpack.c.bf16 %v146_v63, %v144_v62  ;;  %v145_v4 = vld [vmem:[#allocation5 + $0x150] sm:$0xff]  ;;  %v148_v5 = vld [vmem:[#allocation5 + $0x168] sm:$0xff]  ;;  %v150_v6 = vld [vmem:[#allocation5 + $0x178] sm:$0xff] }
  0x47   :  { %722 = vmatpush1.bf16.msra.mxu0 %v721_v25  ;;  %v749_v7 = vpack.c.bf16 %v145_v4, %v143_v3  ;;  %v751_v8 = vpack.c.bf16 %v150_v6, %v148_v5  ;;  %v147_v9 = vld [vmem:[#allocation5 + $0x160] sm:$0xff]  ;;  %v149_v10 = vld [vmem:[#allocation5 + $0x170] sm:$0xff]  ;;  %v152_v11 = vld [vmem:[#allocation5 + $0x188] sm:$0xff] }
  0x48   :  { %724 = vmatprep.subr.bf16.mxu0 %v723_v26  ;;  %v154_v12 = vld [vmem:[#allocation5 + $0x198] sm:$0xff]  ;;  %v151_v14 = vld [vmem:[#allocation5 + $0x180] sm:$0xff]  ;;  %v153_v15 = vld [vmem:[#allocation5 + $0x190] sm:$0xff]  ;;  %v753_v19 = vpack.c.bf16 %v149_v10, %v147_v9 }
  0x49   :  { %v1192_v16 = vld [vmem:[#allocation2 + $0x8] sm:$0xff]  ;;  %v398_v17 = vld [vmem:[#allocation7 + $0x8] sm:$0xff]  ;;  %v397_v22 = vld [vmem:[#allocation7] sm:$0xff]  ;;  %v755_v25 = vpack.c.bf16 %v154_v12, %v152_v11  ;;  %v757_v36 = vpack.c.bf16 %v153_v15, %v151_v14  ;;  %v67_v15 = vmul.f32 0.5, %v1182_v41 }
  0x4a   :  { %v400_v18 = vld [vmem:[#allocation7 + $0x18] sm:$0xff]  ;;  %v156_v20 = vld [vmem:[#allocation5 + $0x1a8] sm:$0xff]  ;;  %v399_v23 = vld [vmem:[#allocation7 + $0x10] sm:$0xff]  ;;  %983 = vtanh.f32 %v1192_v16 }
  0x4b   :  { %726 = vmatpush1.bf16.msra.mxu0 %v725_v31  ;;  %v1194_v21 = vpack.c.bf16 %v400_v18, %v398_v17  ;;  %v402_v24 = vld [vmem:[#allocation7 + $0x28] sm:$0xff]  ;;  %v1196_v26 = vpack.c.bf16 %v399_v23, %v397_v22  ;;  %v404_v27 = vld [vmem:[#allocation7 + $0x38] sm:$0xff]  ;;  %v401_v28 = vld [vmem:[#allocation7 + $0x20] sm:$0xff]  ;;  %v70_v31 = vmul.f32 0.70710677, %v1192_v16 }
  0x4c   :  { %728 = vmatprep.subr.bf16.mxu0 %v727_v32  ;;  %v1185_v56 = vpop.eup %979  ;;  %v403_v29 = vld [vmem:[#allocation7 + $0x30] sm:$0xff]  ;;  %v158_v30 = vld [vmem:[#allocation5 + $0x1b8] sm:$0xff]  ;;  %v1200_v32 = vpack.c.bf16 %v404_v27, %v402_v24  ;;  %v406_v33 = vld [vmem:[#allocation7 + $0x48] sm:$0xff] }
  0x4d   :  { %v79_v61 = vmul.f32 4.0, %v1185_v56  ;;  %836 = vmatprep.subr.bf16.mxu1 %v1194_v21  ;;  %v408_v34 = vld [vmem:[#allocation7 + $0x58] sm:$0xff]  ;;  %v1204_v35 = vpack.c.bf16 %v403_v29, %v401_v28  ;;  %v405_v39 = vld [vmem:[#allocation7 + $0x40] sm:$0xff]  ;;  %v407_v40 = vld [vmem:[#allocation7 + $0x50] sm:$0xff]  ;;  %v759_v42 = vpack.c.bf16 %v158_v30, %v156_v20  ;;  %985 = verf.f32 %v70_v31 }
  0x4e   :  { %838 = vmatpush1.bf16.msra.mxu1 %v1196_v26  ;;  %v157_v43 = vld [vmem:[#allocation5 + $0x1b0] sm:$0xff]  ;;  %v160_v46 = vld [vmem:[#allocation5 + $0x1c8] sm:$0xff]  ;;  %v162_v47 = vld [vmem:[#allocation5 + $0x1d8] sm:$0xff]  ;;  %v1210_v48 = vpack.c.bf16 %v407_v40, %v405_v39  ;;  %v93_v23 = vmul.f32 1.8666667, %v1185_v56 }
  0x4f   :  { %730 = vmatpush1.bf16.msra.mxu0 %v729_v37  ;;  %v1188_v0 = vmul.f32 0.5, %v79_v61  ;;  %v155_v37 = vld [vmem:[#allocation5 + $0x1a0] sm:$0xff]  ;;  %840 = vmatprep.subr.bf16.mxu1 %v1200_v32  ;;  %v411_v54 = vld [vmem:[#allocation7 + $0x70] sm:$0xff]  ;;  %v763_v55 = vpack.c.bf16 %v162_v47, %v160_v46  ;;  %v416_v59 = vld [vmem:[#allocation7 + $0x98] sm:$0xff] }
  0x50   :  { %732 = vmatprep.subr.bf16.mxu0 %v731_v38  ;;  %v1207_v38 = vpack.c.bf16 %v408_v34, %v406_v33  ;;  %v761_v49 = vpack.c.bf16 %v157_v43, %v155_v37  ;;  %v409_v53 = vld [vmem:[#allocation7 + $0x60] sm:$0xff]  ;;  %v164_v60 = vld [vmem:[#allocation5 + $0x1e8] sm:$0xff]  ;;  %v166_v61 = vld [vmem:[#allocation5 + $0x1f8] sm:$0xff]  ;;  %v68_v37 = vmul.f32 0.5, %v1192_v16 }
  0x51   :  { %307 = vmatprep.mubr.f32.mxu0 %v1188_v0  ;;  %v163_v62 = vld [vmem:[#allocation5 + $0x1e0] sm:$0xff]  ;;  %v1217_v63 = vpack.c.bf16 %v411_v54, %v409_v53  ;;  %v165_v3 = vld [vmem:[#allocation5 + $0x1f0] sm:$0xff]  ;;  %v767_v9 = vpack.c.bf16 %v166_v61, %v164_v60  ;;  %v418_v10 = vld [vmem:[#allocation7 + $0xa8] sm:$0xff] }
  0x52   :  { %842 = vmatpush1.bf16.msra.mxu1 %v1204_v35  ;;  %v413_v6 = vld [vmem:[#allocation7 + $0x80] sm:$0xff]  ;;  %v420_v11 = vld [vmem:[#allocation7 + $0xb8] sm:$0xff]  ;;  %v168_v12 = vld [vmem:[#allocation5 + $0x208] sm:$0xff]  ;;  %v769_v14 = vpack.c.bf16 %v165_v3, %v163_v62 }
  0x53   :  { %734 = vmatpush1.bf16.msra.mxu0 %v733_v44  ;;  %v410_v44 = vld [vmem:[#allocation7 + $0x68] sm:$0xff]  ;;  %844 = vmatprep.subr.bf16.mxu1 %v1207_v38  ;;  %v170_v13 = vld [vmem:[#allocation5 + $0x218] sm:$0xff]  ;;  %v1234_v24 = vpack.c.bf16 %v420_v11, %v418_v10  ;;  %v419_v27 = vld [vmem:[#allocation7 + $0xb0] sm:$0xff] }
  0x54   :  { %736 = vmatprep.subr.bf16.mxu0 %v735_v45  ;;  %v412_v45 = vld [vmem:[#allocation7 + $0x78] sm:$0xff]  ;;  %v771_v41 = vpack.c.bf16 %v170_v13, %v168_v12  ;;  %v167_v28 = vld [vmem:[#allocation5 + $0x200] sm:$0xff]  ;;  %v169_v29 = vld [vmem:[#allocation5 + $0x210] sm:$0xff] }
  0x55   :  { %v1214_v52 = vpack.c.bf16 %v412_v45, %v410_v44  ;;  %v172_v30 = vld [vmem:[#allocation5 + $0x228] sm:$0xff]  ;;  %v174_v31 = vld [vmem:[#allocation5 + $0x238] sm:$0xff]  ;;  %v773_v40 = vpack.c.bf16 %v169_v29, %v167_v28  ;;  %v99_v44 = vmul.f32 0.8, %v1188_v0  ;;  %v421_v45 = vld [vmem:[#allocation7 + $0xc0] sm:$0xff] }
  0x56   :  { %846 = vmatpush1.bf16.msra.mxu1 %v1210_v48  ;;  %v422_v33 = vld [vmem:[#allocation7 + $0xc8] sm:$0xff]  ;;  %v424_v34 = vld [vmem:[#allocation7 + $0xd8] sm:$0xff]  ;;  %v423_v46 = vld [vmem:[#allocation7 + $0xd0] sm:$0xff]  ;;  %v775_v47 = vpack.c.bf16 %v174_v31, %v172_v30 }
  0x57   :  { %738 = vmatpush1.bf16.msra.mxu0 %v737_v50  ;;  %v159_v50 = vld [vmem:[#allocation5 + $0x1c0] sm:$0xff]  ;;  %848 = vmatprep.subr.bf16.mxu1 %v1214_v52  ;;  %v178_v53 = vld [vmem:[#allocation5 + $0x258] sm:$0xff]  ;;  %v426_v54 = vld [vmem:[#allocation7 + $0xe8] sm:$0xff] }
  0x58   :  { %740 = vmatprep.subr.bf16.mxu0 %v739_v51  ;;  %v85_v51 = vmul.f32 1.875, %v1185_v56  ;;  %v171_v16 = vld [vmem:[#allocation5 + $0x220] sm:$0xff]  ;;  %v427_v62 = vld [vmem:[#allocation7 + $0xf0] sm:$0xff] }
  0x59   :  { %v425_v61 = vld [vmem:[#allocation7 + $0xe0] sm:$0xff] }
  0x5a   :  { %v89_v4 = vmul.f32 %v85_v51, %v1188_v0  ;;  %850 = vmatpush1.bf16.msra.mxu1 %v1217_v63  ;;  %v1245_v51 = vpack.c.bf16 %v424_v34, %v422_v33  ;;  %v1255_v10 = vpack.c.bf16 %v427_v62, %v425_v61  ;;  %v179_v12 = vld [vmem:[#allocation5 + $0x260] sm:$0xff]  ;;  %v435_v33 = vld [vmem:[#allocation7 + $0x130] sm:$0xff] }
  0x5b   :  { %742 = vmatpush1.bf16.msra.mxu0 %v741_v57  ;;  %v161_v57 = vld [vmem:[#allocation5 + $0x1d0] sm:$0xff]  ;;  %v183_v29 = vld [vmem:[#allocation5 + $0x280] sm:$0xff] }
  0x5c   :  { %744 = vmatprep.subr.bf16.mxu0 %v743_v58  ;;  %v414_v58 = vld [vmem:[#allocation7 + $0x88] sm:$0xff]  ;;  %v1230_v22 = vadd.f32 -0.75, %v89_v4  ;;  %v433_v31 = vld [vmem:[#allocation7 + $0x120] sm:$0xff] }
  0x5d   :  { %v1221_v5 = vpack.c.bf16 %v416_v59, %v414_v58  ;;  %v1248_v58 = vpack.c.bf16 %v423_v46, %v421_v45  ;;  %v175_v59 = vld [vmem:[#allocation5 + $0x240] sm:$0xff]  ;;  %v430_v4 = vld [vmem:[#allocation7 + $0x108] sm:$0xff] }
  0x5e   :  { %v97_v43 = vmul.f32 %v1230_v22, %v93_v23  ;;  %v436_v23 = vld [vmem:[#allocation7 + $0x138] sm:$0xff]  ;;  %v187_v46 = vld [vmem:[#allocation5 + $0x2a0] sm:$0xff] }
  0x5f   :  { %746 = vmatpush1.bf16.msra.mxu0 %v745_v1  ;;  %v982_v1 = vpop.eup %981  ;;  %852 = vmatprep.subr.bf16.mxu1 %v1221_v5  ;;  %v191_v61 = vld [vmem:[#allocation5 + $0x2c0] sm:$0xff] }
  0x60   :  { %748 = vmatprep.subr.bf16.mxu0 %v747_v2  ;;  %v765_v2 = vpack.c.bf16 %v161_v57, %v159_v50  ;;  %v73_v17 = vadd.f32 1.0, %v982_v1  ;;  %v176_v50 = vld [vmem:[#allocation5 + $0x248] sm:$0xff]  ;;  %v101_v60 = vsub.f32 %v97_v43, %v99_v44  ;;  %v190_v43 = vld [vmem:[#allocation5 + $0x2b8] sm:$0xff]  ;;  %v1267_v44 = vpack.c.bf16 %v435_v33, %v433_v31 }
  0x61   :  { %v779_v1 = vpack.c.bf16 %v178_v53, %v176_v50  ;;  %v189_v53 = vld [vmem:[#allocation5 + $0x2b0] sm:$0xff]  ;;  %v200_v31 = vld [vmem:[#allocation5 + $0x308] sm:$0xff]  ;;  %v202_v33 = vld [vmem:[#allocation5 + $0x318] sm:$0xff] }
  0x63   :  { %750 = vmatpush1.bf16.msra.mxu0 %v749_v7  ;;  %v415_v7 = vld [vmem:[#allocation7 + $0x90] sm:$0xff] }
  0x64   :  { %752 = vmatprep.subr.bf16.mxu0 %v751_v8  ;;  %v1223_v8 = vpop.eup %983  ;;  %v1227_v18 = vpack.c.bf16 %v415_v7, %v413_v6  ;;  %v432_v6 = vld [vmem:[#allocation7 + $0x118] sm:$0xff]  ;;  %v180_v7 = vld [vmem:[#allocation5 + $0x268] sm:$0xff] }
  0x65   :  { %v80_v20 = vmul.f32 4.0, %v1223_v8  ;;  %v1257_v13 = vpack.c.bf16 %v432_v6, %v430_v4  ;;  %v193_v6 = vld [vmem:[#allocation5 + $0x2d0] sm:$0xff] }
  0x66   :  { %854 = vmatpush1.bf16.msra.mxu1 %v1227_v18 }
  0x67   :  { %754 = vmatpush1.bf16.msra.mxu0 %v753_v19  ;;  %v986_v19 = vpop.eup %985  ;;  %856 = vmatprep.subr.bf16.mxu1 %v1234_v24 }
  0x68   :  { %756 = vmatprep.subr.bf16.mxu0 %v755_v25  ;;  %v417_v25 = vld [vmem:[#allocation7 + $0xa0] sm:$0xff]  ;;  %v74_v39 = vadd.f32 1.0, %v986_v19  ;;  %v181_v19 = vld [vmem:[#allocation5 + $0x270] sm:$0xff] }
  0x69   :  { %v1238_v56 = vpack.c.bf16 %v419_v27, %v417_v25  ;;  %v184_v25 = vld [vmem:[#allocation5 + $0x288] sm:$0xff]  ;;  %v186_v27 = vld [vmem:[#allocation5 + $0x298] sm:$0xff]  ;;  %v785_v28 = vpack.c.bf16 %v181_v19, %v179_v12 }
  0x6a   :  { %v76_v57 = vmul.f32 %v74_v39, %v68_v37  ;;  %v787_v34 = vpack.c.bf16 %v186_v27, %v184_v25  ;;  %v438_v37 = vld [vmem:[#allocation7 + $0x148] sm:$0xff]  ;;  %v440_v39 = vld [vmem:[#allocation7 + $0x158] sm:$0xff]  ;;  %v197_v27 = vld [vmem:[#allocation5 + $0x2f0] sm:$0xff] }
  0x6b   :  { %758 = vmatpush1.bf16.msra.mxu0 %v757_v36  ;;  %v75_v36 = vmul.f32 %v73_v17, %v67_v15  ;;  %858 = vmatpush1.bf16.msra.mxu1 %v1238_v56  ;;  %v431_v15 = vld [vmem:[#allocation7 + $0x110] sm:$0xff]  ;;  %v198_v12 = vld [vmem:[#allocation5 + $0x2f8] sm:$0xff] }
  0x6c   :  { %760 = vmatprep.subr.bf16.mxu0 %v759_v42  ;;  %v1240_v42 = vmul.f32 0.5, %v80_v20  ;;  %860 = vmatprep.subr.bf16.mxu1 %v1245_v51  ;;  %v434_v20 = vld [vmem:[#allocation7 + $0x128] sm:$0xff] }
  0x6d   :  { %v1264_v30 = vpack.c.bf16 %v436_v23, %v434_v20  ;;  %v445_v20 = vld [vmem:[#allocation7 + $0x180] sm:$0xff]  ;;  %v447_v23 = vld [vmem:[#allocation7 + $0x190] sm:$0xff] }
  0x6f   :  { %762 = vmatpush1.bf16.msra.mxu0 %v761_v49  ;;  %v173_v49 = vld [vmem:[#allocation5 + $0x230] sm:$0xff]  ;;  %862 = vmatpush1.bf16.msra.mxu1 %v1248_v58 }
  0x70   :  { %764 = vmatprep.subr.bf16.mxu0 %v763_v55  ;;  %v428_v55 = vld [vmem:[#allocation7 + $0xf8] sm:$0xff]  ;;  %v777_v0 = vpack.c.bf16 %v173_v49, %v171_v16  ;;  %v437_v16 = vld [vmem:[#allocation7 + $0x140] sm:$0xff]  ;;  %v439_v49 = vld [vmem:[#allocation7 + $0x150] sm:$0xff] }
  0x71   :  { %v1252_v3 = vpack.c.bf16 %v428_v55, %v426_v54  ;;  %v442_v54 = vld [vmem:[#allocation7 + $0x168] sm:$0xff]  ;;  %v444_v55 = vld [vmem:[#allocation7 + $0x178] sm:$0xff] }
  0x72   :  { %v1276_v62 = vpack.c.bf16 %v444_v55, %v442_v54 }
  0x73   :  { %766 = vmatpush1.bf16.msra.mxu0 %v765_v2  ;;  %v177_v2 = vld [vmem:[#allocation5 + $0x250] sm:$0xff]  ;;  %864 = vmatprep.subr.bf16.mxu1 %v1252_v3 }
  0x74   :  { %768 = vmatprep.subr.bf16.mxu0 %v767_v9  ;;  %v182_v9 = vld [vmem:[#allocation5 + $0x278] sm:$0xff]  ;;  %v781_v11 = vpack.c.bf16 %v177_v2, %v175_v59  ;;  %866 = vmatpush1.bf16.msra.mxu1 %v1255_v10  ;;  %v1273_v59 = vpack.c.bf16 %v439_v49, %v437_v16  ;;  %v443_v2 = vld [vmem:[#allocation7 + $0x170] sm:$0xff]  ;;  %v454_v16 = vld [vmem:[#allocation7 + $0x1c8] sm:$0xff] }
  0x75   :  { %v783_v17 = vpack.c.bf16 %v182_v9, %v180_v7  ;;  %868 = vmatprep.subr.bf16.mxu1 %v1257_v13  ;;  %v446_v7 = vld [vmem:[#allocation7 + $0x188] sm:$0xff]  ;;  %v448_v9 = vld [vmem:[#allocation7 + $0x198] sm:$0xff] }
  0x76   :  { %v1282_v19 = vpack.c.bf16 %v448_v9, %v446_v7  ;;  %v456_v49 = vld [vmem:[#allocation7 + $0x1d8] sm:$0xff] }
  0x77   :  { %770 = vmatpush1.bf16.msra.mxu0 %v769_v14  ;;  %v429_v14 = vld [vmem:[#allocation7 + $0x100] sm:$0xff] }
  0x78   :  { %772 = vmatprep.subr.bf16.mxu0 %v771_v41  ;;  %v1261_v41 = vpack.c.bf16 %v431_v15, %v429_v14  ;;  %v797_v15 = vpack.c.bf16 %v193_v6, %v191_v61  ;;  %v210_v6 = vld [vmem:[#allocation5 + $0x358] sm:$0xff] }
  0x7a   :  { %308 = vmatmul.mubr.f32.vlgmr.msra.gmra.mrb[0].mxu0 %v75_v36  ;;  %v185_v36 = vld [vmem:[#allocation5 + $0x290] sm:$0xff]  ;;  %870 = vmatpush1.bf16.msra.mxu1 %v1261_v41 }
  0x7b   :  { %774 = vmatpush1.bf16.msra.mxu0 %v773_v40  ;;  %313 = vmatprep.mubr.f32.mxu0 %v1240_v42  ;;  %v188_v40 = vld [vmem:[#allocation5 + $0x2a8] sm:$0xff]  ;;  %v789_v45 = vpack.c.bf16 %v185_v36, %v183_v29  ;;  %v452_v29 = vld [vmem:[#allocation7 + $0x1b8] sm:$0xff] }
  0x7c   :  { %776 = vmatprep.subr.bf16.mxu0 %v775_v47  ;;  %872 = vmatprep.subr.bf16.mxu1 %v1264_v30  ;;  %v1270_v47 = vpack.c.bf16 %v440_v39, %v438_v37  ;;  %v791_v50 = vpack.c.bf16 %v190_v43, %v188_v40  ;;  %v199_v37 = vld [vmem:[#allocation5 + $0x300] sm:$0xff]  ;;  %v451_v43 = vld [vmem:[#allocation7 + $0x1b0] sm:$0xff] }
  0x7d   :  { %v449_v40 = vld [vmem:[#allocation7 + $0x1a0] sm:$0xff] }
  0x7e   :  { %314 = vmatmul.mubr.f32.gmra.mrb[2].mxu0 %v76_v57  ;;  %v192_v57 = vld [vmem:[#allocation5 + $0x2c8] sm:$0xff]  ;;  %874 = vmatpush1.bf16.msra.mxu1 %v1267_v44  ;;  %v1291_v54 = vpack.c.bf16 %v451_v43, %v449_v40  ;;  %v217_v40 = vld [vmem:[#allocation5 + $0x390] sm:$0xff] }
  0x7f   :  { %778 = vmatpush1.bf16.msra.mxu0 %v777_v0  ;;  %384 = vmatprep.mubr.f32.mxu0 %v101_v60  ;;  %v194_v0 = vld [vmem:[#allocation5 + $0x2d8] sm:$0xff]  ;;  %v793_v60 = vpack.c.bf16 %v189_v53, %v187_v46  ;;  %v201_v46 = vld [vmem:[#allocation5 + $0x310] sm:$0xff]  ;;  %v220_v43 = vld [vmem:[#allocation5 + $0x3a8] sm:$0xff] }
  0x80   :  { %780 = vmatprep.subr.bf16.mxu0 %v779_v1  ;;  %876 = vmatprep.subr.bf16.mxu1 %v1270_v47  ;;  %v441_v1 = vld [vmem:[#allocation7 + $0x160] sm:$0xff]  ;;  %v795_v4 = vpack.c.bf16 %v194_v0, %v192_v57  ;;  %v206_v53 = vld [vmem:[#allocation5 + $0x338] sm:$0xff]  ;;  %v805_v55 = vpack.c.bf16 %v201_v46, %v199_v37  ;;  %v1294_v57 = vpack.c.bf16 %v456_v49, %v454_v16  ;;  %v86_v16 = vmul.f32 1.875, %v1223_v8 }
  0x81   :  { %v1279_v14 = vpack.c.bf16 %v443_v2, %v441_v1  ;;  %v453_v0 = vld [vmem:[#allocation7 + $0x1c0] sm:$0xff]  ;;  %v205_v2 = vld [vmem:[#allocation5 + $0x330] sm:$0xff] }
  0x82   :  { %878 = vmatpush1.bf16.msra.mxu1 %v1273_v59  ;;  %v203_v1 = vld [vmem:[#allocation5 + $0x320] sm:$0xff] }
  0x83   :  { %782 = vmatpush1.bf16.msra.mxu0 %v781_v11  ;;  %v196_v11 = vld [vmem:[#allocation5 + $0x2e8] sm:$0xff]  ;;  %880 = vmatprep.subr.bf16.mxu1 %v1276_v62  ;;  %v809_v9 = vpack.c.bf16 %v205_v2, %v203_v1  ;;  %v215_v37 = vld [vmem:[#allocation5 + $0x380] sm:$0xff] }
  0x84   :  { %784 = vmatprep.subr.bf16.mxu0 %v783_v17  ;;  %v195_v17 = vld [vmem:[#allocation5 + $0x2e0] sm:$0xff]  ;;  %v799_v25 = vpack.c.bf16 %v198_v12, %v196_v11  ;;  %v821_v46 = vpack.c.bf16 %v217_v40, %v215_v37  ;;  %v459_v37 = vld [vmem:[#allocation7 + $0x1f0] sm:$0xff] }
  0x85   :  { %v801_v36 = vpack.c.bf16 %v197_v27, %v195_v17  ;;  %v207_v12 = vld [vmem:[#allocation5 + $0x340] sm:$0xff]  ;;  %v212_v17 = vld [vmem:[#allocation5 + $0x368] sm:$0xff] }
  0x86   :  { %882 = vmatpush1.bf16.msra.mxu1 %v1279_v14  ;;  %v211_v27 = vld [vmem:[#allocation5 + $0x360] sm:$0xff] }
  0x87   :  { %786 = vmatpush1.bf16.msra.mxu0 %v785_v28  ;;  %v450_v28 = vld [vmem:[#allocation7 + $0x1a8] sm:$0xff]  ;;  %884 = vmatprep.subr.bf16.mxu1 %v1282_v19  ;;  %v223_v2 = vld [vmem:[#allocation5 + $0x3c0] sm:$0xff] }
  0x88   :  { %788 = vmatprep.subr.bf16.mxu0 %v787_v34  ;;  %v1285_v34 = vpack.c.bf16 %v447_v23, %v445_v20  ;;  %v1288_v39 = vpack.c.bf16 %v452_v29, %v450_v28  ;;  %v214_v20 = vld [vmem:[#allocation5 + $0x378] sm:$0xff]  ;;  %v213_v28 = vld [vmem:[#allocation5 + $0x370] sm:$0xff]  ;;  %v216_v29 = vld [vmem:[#allocation5 + $0x388] sm:$0xff] }
  0x8a   :  { %886 = vmatpush1.bf16.msra.mxu1 %v1285_v34 }
  0x8b   :  { %790 = vmatpush1.bf16.msra.mxu0 %v789_v45  ;;  %v803_v45 = vpack.c.bf16 %v202_v33, %v200_v31  ;;  %888 = vmatprep.subr.bf16.mxu1 %v1288_v39  ;;  %v218_v31 = vld [vmem:[#allocation5 + $0x398] sm:$0xff]  ;;  %v817_v33 = vpack.c.bf16 %v213_v28, %v211_v27  ;;  %v100_v28 = vmul.f32 0.8, %v1240_v42 }
  0x8c   :  { %792 = vmatprep.subr.bf16.mxu0 %v791_v50  ;;  %v204_v50 = vld [vmem:[#allocation5 + $0x328] sm:$0xff] }
  0x8d   :  { %v807_v61 = vpack.c.bf16 %v206_v53, %v204_v50  ;;  %v219_v50 = vld [vmem:[#allocation5 + $0x3a0] sm:$0xff]  ;;  %v221_v53 = vld [vmem:[#allocation5 + $0x3b0] sm:$0xff] }
  0x8e   :  { %890 = vmatpush1.bf16.msra.mxu1 %v1291_v54 }
  0x8f   :  { %794 = vmatpush1.bf16.msra.mxu0 %v793_v60  ;;  %v455_v60 = vld [vmem:[#allocation7 + $0x1d0] sm:$0xff]  ;;  %892 = vmatprep.subr.bf16.mxu1 %v1294_v57 }
  0x90   :  { %796 = vmatprep.subr.bf16.mxu0 %v795_v4  ;;  %v208_v4 = vld [vmem:[#allocation5 + $0x348] sm:$0xff]  ;;  %v1297_v7 = vpack.c.bf16 %v455_v60, %v453_v0  ;;  %v226_v0 = vld [vmem:[#allocation5 + $0x3d8] sm:$0xff]  ;;  %v825_v60 = vpack.c.bf16 %v221_v53, %v219_v50 }
  0x91   :  { %v811_v11 = vpack.c.bf16 %v210_v6, %v208_v4  ;;  %v225_v4 = vld [vmem:[#allocation5 + $0x3d0] sm:$0xff]  ;;  %v228_v6 = vld [vmem:[#allocation5 + $0x3e8] sm:$0xff] }
  0x92   :  { %894 = vmatpush1.bf16.msra.mxu1 %v1297_v7 }
  0x93   :  { %798 = vmatpush1.bf16.msra.mxu0 %v797_v15  ;;  %v209_v15 = vld [vmem:[#allocation5 + $0x350] sm:$0xff] }
  0x94   :  { %800 = vmatprep.subr.bf16.mxu0 %v799_v25  ;;  %v813_v23 = vpack.c.bf16 %v209_v15, %v207_v12  ;;  %v815_v25 = vpack.c.bf16 %v214_v20, %v212_v17  ;;  %v94_v15 = vmul.f32 1.8666667, %v1223_v8  ;;  %v227_v20 = vld [vmem:[#allocation5 + $0x3e0] sm:$0xff] }
  0x95   :  { %v457_v8 = vld [vmem:[#allocation7 + $0x1e0] sm:$0xff] }
  0x96   :  { %v897_v40 = vpack.c.bf16 %v459_v37, %v457_v8 }
  0x97   :  { %802 = vmatpush1.bf16.msra.mxu0 %v801_v36  ;;  %v819_v36 = vpack.c.bf16 %v218_v31, %v216_v29  ;;  %v458_v31 = vld [vmem:[#allocation7 + $0x1e8] sm:$0xff] }
  0x98   :  { %804 = vmatprep.subr.bf16.mxu0 %v803_v45  ;;  %v222_v45 = vld [vmem:[#allocation5 + $0x3b8] sm:$0xff] }
  0x99   :  { %v823_v49 = vpack.c.bf16 %v222_v45, %v220_v43  ;;  %v233_v43 = vlaneseq }
  0x9b   :  { %806 = vmatpush1.bf16.msra.mxu0 %v805_v55  ;;  %v224_v55 = vld [vmem:[#allocation5 + $0x3c8] sm:$0xff]  ;;  %v234_v45 = vshrl.u32 %v233_v43, 7 }
  0x9c   :  { %808 = vmatprep.subr.bf16.mxu0 %v807_v61  ;;  %v90_v61 = vmul.f32 %v86_v16, %v1240_v42  ;;  %v827_v1 = vpack.c.bf16 %v226_v0, %v224_v55 }
  0x9d   :  { %v1307_v42 = vsub.s32 1, %v234_v45 }
  0x9e   :  { %v706_v12 = vadd.f32 -0.75, %v90_v61 }
  0x9f   :  { %810 = vmatpush1.bf16.msra.mxu0 %v809_v9  ;;  %v230_v9 = vld [vmem:[#allocation5 + $0x3f8] sm:$0xff] }
  0xa0   :  { %812 = vmatprep.subr.bf16.mxu0 %v811_v11  ;;  %v829_v11 = vpack.c.bf16 %v225_v4, %v223_v2  ;;  %v831_v17 = vpack.c.bf16 %v230_v9, %v228_v6  ;;  %v98_v27 = vmul.f32 %v706_v12, %v94_v15 }
  0xa2   :  { %v102_v29 = vsub.f32 %v98_v27, %v100_v28 }
  0xa3   :  { %814 = vmatpush1.bf16.msra.mxu0 %v813_v23  ;;  %v229_v23 = vld [vmem:[#allocation5 + $0x3f0] sm:$0xff] }
  0xa4   :  { %816 = vmatprep.subr.bf16.mxu0 %v815_v25  ;;  %v833_v25 = vpack.c.bf16 %v229_v23, %v227_v20 }
  0xa7   :  { %818 = vmatpush1.bf16.msra.mxu0 %v817_v33  ;;  %v460_v33 = vld [vmem:[#allocation7 + $0x1f8] sm:$0xff] }
  0xa8   :  { %820 = vmatprep.subr.bf16.mxu0 %v819_v36  ;;  %v895_v36 = vpack.c.bf16 %v460_v33, %v458_v31 }
  0xaa   :  { %896 = vmatprep.subr.bf16.mxu1 %v895_v36 }
  0xab   :  { %822 = vmatpush1.bf16.msra.mxu0 %v821_v46  ;;  %898 = vmatpush1.bf16.msra.mxu1 %v897_v40  ;;  %v1312_v46 = vsub.s32 0, %v234_v45 }
  0xac   :  { %824 = vmatprep.subr.bf16.mxu0 %v823_v49  ;;  %900 = vmatprep.subr.bf16.mxu1 %v1194_v21 }
  0xaf   :  { %826 = vmatpush1.bf16.msra.mxu0 %v825_v60 }
  0xb0   :  { %828 = vmatprep.subr.bf16.mxu0 %v827_v1 }
  0xb3   :  { %830 = vmatpush1.bf16.msra.mxu0 %v829_v11 }
  0xb4   :  { %832 = vmatprep.subr.bf16.mxu0 %v831_v17 }
  0xb7   :  { %834 = vmatpush1.bf16.msra.mxu0 %v833_v25 }
  0xba   :  { %385 = vmatmul.mubr.f32.vlgmr.msra.gmra.mrb[0].mxu0 %v1230_v22  ;;  %v231_v22 = vld [vmem:[%s1373_s3] sm:$0x3] }
  0xbb   :  { %390 = vmatprep.mubr.f32.mxu0 %v102_v29  ;;  %v240_v16 = vrot.slane %v231_v22, %v1307_v42  ;;  %v236_v49 = vrot.slane %v231_v22, %v1312_v46 }
  0xbe   :  { %391 = vmatmul.mubr.f32.gmra.mrb[2].mxu0 %v706_v12 }
 0x18d   :  { %v386_v50 = vpop.f32.mrb[0].mxu0 }
 0x18e   :  { %v388_v53 = vpop.f32.mrb[1].mxu0  ;;  %v963_v0 = vadd.f32 %v386_v50, %v236_v49 }
 0x18f   :  { %v964_v55 = vadd.f32 %v388_v53, %v240_v16 }
 0x191   :  { %v392_v60 = vpop.f32.mrb[2].mxu0  ;;  %525 = vmatprep.mubr.f32.mxu1 %v964_v55 }
 0x192   :  { %v394_v21 = vpop.f32.mrb[3].mxu0  ;;  %526 = vmatmul.mubr.f32.vlgmr.msra.gmra.mrb[0].mxu1 %v963_v0  ;;  %v965_v1 = vadd.f32 %v392_v60, %v236_v49 }
 0x193   :  { %v966_v61 = vadd.f32 %v394_v21, %v240_v16  ;;  %902 = vmatpush1.bf16.msra.mxu1 %v1196_v26 }
 0x194   :  { %904 = vmatprep.subr.bf16.mxu1 %v1200_v32 }
 0x195   :  { %531 = vmatprep.mubr.f32.mxu1 %v966_v61 }
 0x196   :  { %532 = vmatmul.mubr.f32.gmra.mrb[2].mxu1 %v965_v1 }
 0x197   :  { %906 = vmatpush1.bf16.msra.mxu1 %v1204_v35 }
 0x198   :  { %908 = vmatprep.subr.bf16.mxu1 %v1207_v38 }
 0x19b   :  { %910 = vmatpush1.bf16.msra.mxu1 %v1210_v48 }
 0x19c   :  { %912 = vmatprep.subr.bf16.mxu1 %v1214_v52 }
 0x19f   :  { %914 = vmatpush1.bf16.msra.mxu1 %v1217_v63 }
 0x1a0   :  { %916 = vmatprep.subr.bf16.mxu1 %v1221_v5 }
 0x1a3   :  { %918 = vmatpush1.bf16.msra.mxu1 %v1227_v18 }
 0x1a4   :  { %920 = vmatprep.subr.bf16.mxu1 %v1234_v24 }
 0x1a7   :  { %922 = vmatpush1.bf16.msra.mxu1 %v1238_v56 }
 0x1a8   :  { %924 = vmatprep.subr.bf16.mxu1 %v1245_v51 }
 0x1ab   :  { %926 = vmatpush1.bf16.msra.mxu1 %v1248_v58 }
 0x1ac   :  { %928 = vmatprep.subr.bf16.mxu1 %v1252_v3 }
 0x1af   :  { %930 = vmatpush1.bf16.msra.mxu1 %v1255_v10 }
 0x1b0   :  { %932 = vmatprep.subr.bf16.mxu1 %v1257_v13 }
 0x1b3   :  { %934 = vmatpush1.bf16.msra.mxu1 %v1261_v41 }
 0x1b4   :  { %936 = vmatprep.subr.bf16.mxu1 %v1264_v30 }
 0x1b7   :  { %938 = vmatpush1.bf16.msra.mxu1 %v1267_v44 }
 0x1b8   :  { %940 = vmatprep.subr.bf16.mxu1 %v1270_v47 }
 0x1bb   :  { %942 = vmatpush1.bf16.msra.mxu1 %v1273_v59  ;;  %v631_v59 = vld [vmem:[%s1374_s4] sm:$0x3]  ;;  %s1104_s4 = smov [#allocation8]  }
 0x1bc   :  { %944 = vmatprep.subr.bf16.mxu1 %v1276_v62  ;;  %v647_v62 = vld [vmem:[%s1375_s5] sm:$0x3]  ;;  %s692_s5 = sshll.u32 %s1104_s4, 4  ;;  %s693_s5 = int_to_ptr.vmem [resolvable:$true] %s692_s5 }
 0x1bd   :  { %s1069_s17 = scalar_lea.vmem %s693_s5, 512  ;;  %p1074_p11 = scmp.lt.s32.totalorder %s693_s5, %s693_s5 }
 0x1be   :  { %p1070_p10 = scmp.ne.s32.totalorder %s693_s5, %s1069_s17  ;;  %p1075_p12 = scmp.lt.s32.totalorder %s1069_s17, %s1069_s17 }
 0x1bf   :  { %946 = vmatpush1.bf16.msra.mxu1 %v1279_v14  ;;  %v636_v14 = vrot.slane %v631_v59, %v1312_v46 }
 0x1c0   :  { %948 = vmatprep.subr.bf16.mxu1 %v1282_v19  ;;  %p1076_p13 = por %p1075_p12, %p1074_p11 }
 0x1c2   :  { %p1077_p0 = pnand %p1076_p13, %p1070_p10 }
 0x1c3   :  { %950 = vmatpush1.bf16.msra.mxu1 %v1285_v34  ;;  %v640_v34 = vrot.slane %v631_v59, %v1307_v42 }
 0x1c4   :  { %952 = vmatprep.subr.bf16.mxu1 %v1288_v39 }
 0x1c7   :  { %954 = vmatpush1.bf16.msra.mxu1 %v1291_v54  ;;  %v652_v54 = vrot.slane %v647_v62, %v1312_v46 }
 0x1c8   :  { %956 = vmatprep.subr.bf16.mxu1 %v1294_v57 }
 0x1cb   :  { %958 = vmatpush1.bf16.msra.mxu1 %v1297_v7  ;;  %v656_v7 = vrot.slane %v647_v62, %v1307_v42 }
 0x1cc   :  { %960 = vmatprep.subr.bf16.mxu1 %v895_v36 }
 0x1cf   :  { %962 = vmatpush1.bf16.msra.mxu1 %v897_v40 }
 0x265   :  { %v527_v26 = vpop.f32.mrb[0].mxu1 }
 0x266   :  { %v538_v32 = vsub.f32 %v963_v0, %v527_v26  ;;  %v529_v35 = vpop.f32.mrb[1].mxu1 }
 0x267   :  { %v539_v38 = vsub.f32 %v964_v55, %v529_v35 }
 0x268   :  { %v542_v63 = vmul.f32 %v538_v32, %v538_v32 }
 0x269   :  { %v543_v48 = vmul.f32 %v539_v38, %v539_v38  ;;  %v533_v52 = vpop.f32.mrb[2].mxu1 }
 0x26a   :  { %v540_v5 = vsub.f32 %v965_v1, %v533_v52  ;;  %v535_v18 = vpop.f32.mrb[3].mxu1 }
 0x26b   :  { %v541_v24 = vsub.f32 %v966_v61, %v535_v18  ;;  %610 = vmatprep.mubr.f32.mxu1 %v543_v48 }
 0x26c   :  { %611 = vmatmul.mubr.f32.vlgmr.msra.gmra.mrb[4].mxu1 %v542_v63  ;;  %v544_v51 = vmul.f32 %v540_v5, %v540_v5 }
 0x26d   :  { %v545_v56 = vmul.f32 %v541_v24, %v541_v24 }
 0x26f   :  { %616 = vmatprep.mubr.f32.mxu1 %v545_v56 }
 0x270   :  { %617 = vmatmul.mubr.f32.gmra.mrb[6].mxu1 %v544_v51 }
 0x33f   :  { %v612_v58 = vpop.f32.mrb[4].mxu1 }
 0x340   :  { %v613_v3 = vadd.f32 1e-05, %v612_v58  ;;  %v614_v10 = vpop.f32.mrb[5].mxu1 }
 0x341   :  { %v615_v13 = vadd.f32 1e-05, %v614_v10 }
 0x342   :  { %987 = vrsqrt.f32 %v613_v3 }
 0x343   :  { %989 = vrsqrt.f32 %v615_v13  ;;  %v618_v41 = vpop.f32.mrb[6].mxu1 }
 0x344   :  { %v619_v30 = vadd.f32 1e-05, %v618_v41  ;;  %v620_v44 = vpop.f32.mrb[7].mxu1 }
 0x345   :  { %v621_v47 = vadd.f32 1e-05, %v620_v44 }
 0x346   :  { %991 = vrsqrt.f32 %v619_v30 }
 0x347   :  { %993 = vrsqrt.f32 %v621_v47 }
 0x34c   :  { %v988_v19 = vpop.eup %987 }
 0x34d   :  { %v990_v39 = vpop.eup %989  ;;  %v627_v57 = vmul.f32 %v988_v19, %v538_v32 }
 0x34e   :  { %v628_v2 = vmul.f32 %v990_v39, %v539_v38 }
 0x34f   :  { %v643_v4 = vmul.f32 %v636_v14, %v627_v57 }
 0x350   :  { %v992_v6 = vpop.eup %991  ;;  %v644_v9 = vmul.f32 %v640_v34, %v628_v2 }
 0x351   :  { %v994_v11 = vpop.eup %993  ;;  %v629_v12 = vmul.f32 %v992_v6, %v540_v5  ;;  %v659_v15 = vadd.f32 %v652_v54, %v643_v4 }
 0x352   :  { %v630_v17 = vmul.f32 %v994_v11, %v541_v24  ;;  %v660_v20 = vadd.f32 %v656_v7, %v644_v9 }
 0x353   :  { %v645_v23 = vmul.f32 %v636_v14, %v629_v12  ;;  %v667_v25 = vmul.f32 0.70710677, %v659_v15  ;;  %v663_v40 = vmul.f32 0.5, %v659_v15 }
 0x354   :  { %v646_v27 = vmul.f32 %v640_v34, %v630_v17  ;;  %v668_v28 = vmul.f32 0.70710677, %v660_v20  ;;  %v664_v45 = vmul.f32 0.5, %v660_v20 }
 0x355   :  { %v661_v29 = vadd.f32 %v652_v54, %v645_v23  ;;  %995 = verf.f32 %v667_v25 }
 0x356   :  { %v662_v31 = vadd.f32 %v656_v7, %v646_v27  ;;  %997 = verf.f32 %v668_v28 }
 0x357   :  { %v669_v33 = vmul.f32 0.70710677, %v661_v29  ;;  %v665_v50 = vmul.f32 0.5, %v661_v29 }
 0x358   :  { %v670_v36 = vmul.f32 0.70710677, %v662_v31  ;;  %v666_v55 = vmul.f32 0.5, %v662_v31 }
 0x359   :  { %999 = verf.f32 %v669_v33 }
 0x35a   :  { %1001 = verf.f32 %v670_v36 }
 0x35f   :  { %v996_v8 = vpop.eup %995 }
 0x360   :  { %v998_v37 = vpop.eup %997  ;;  %v675_v43 = vadd.f32 1.0, %v996_v8 }
 0x361   :  { %v676_v42 = vadd.f32 1.0, %v998_v37 }
 0x362   :  { %v679_v22 = vmul.f32 %v675_v43, %v663_v40 }
 0x363   :  { %v1000_v46 = vpop.eup %999  ;;  %v680_v16 = vmul.f32 %v676_v42, %v664_v45 }
 0x364   :  { %v1002_v49 = vpop.eup %1001  ;;  %v677_v53 = vadd.f32 1.0, %v1000_v46  ;;  %683 = vst [vmem:[#allocation8] sm:$0xff] %v679_v22 }
 0x365   :  { %v678_v0 = vadd.f32 1.0, %v1002_v49  ;;  %684 = vst [vmem:[#allocation8 + $0x8] sm:$0xff] %v680_v16 }
 0x366   :  { %v681_v60 = vmul.f32 %v677_v53, %v665_v50 }
 0x367   :  { %v682_v21 = vmul.f32 %v678_v0, %v666_v55 }
 0x368   :  { %685 = vst [vmem:[#allocation8 + $0x10] sm:$0xff] %v681_v60 }
 0x369   :  { %686 = vst [vmem:[#allocation8 + $0x18] sm:$0xff] %v682_v21 }
 0x36a   :  { %1080 = shalt.err (!%p1077_p0)
}
 0x36b   :  { %s1081_s20 = scalar_lea.hbm %s1376_s6, 512 }
 0x36c   :  { %p1082_p1 = scmp.ne.s32.totalorder %s1376_s6, %s1081_s20  ;;  %p1085_p2 = scmp.lt.u32.totalorder %s1081_s20, %s1376_s6 }
 0x36e   :  { %p1087_p3 = pnand %p1085_p2, %p1082_p1 }
 0x370   :  { %1090 = shalt.err (!%p1087_p3)
}
 0x371   :  { %698 = dma.vmem_to_hbm [thread:$0]  %s693_s5, 512, %s1376_s6, [#allocation4], %s1098_s7, %s1098_s7, %s1099_s8  }
 0x372   :  { %1095 = dma.done.wait [#allocation4], 512  }
 0x373   :  { %1096 = vsyncadd [#allocation4], 4294966784 }
 0x374   :  { %702 = vsyncpa [#allocation3], 1 }
 0x375   :  { %703 = vsyncpa [#allocation6], 1 }
 0x376   :  { %704 = vsyncpa [#allocation4], 1 }

</bundles_post_ra>
